<compile_context>
chip_gen: v5e
topology: v5e:2x2
jax: 0.10.0
libtpu: 0.0.40
codegen_flags: <defaults>
</compile_context>

<pallas_src>
import math

import jax
import jax.numpy as jnp
from jax.experimental import pallas as pl
from jax.experimental.pallas import tpu as pltpu

# SH normalization constants (identical to the PyTorch module's __init__).
L0 = 1.0 / (2 * math.pi ** 0.5)
L1 = 0.5 * (3.0 / math.pi) ** 0.5
L2M_2 = 0.5 * (15.0 / math.pi) ** 0.5
L2M_1 = 0.5 * (15.0 / math.pi) ** 0.5
L2M0 = 0.25 * (5.0 / math.pi) ** 0.5
L2M1 = 0.5 * (15.0 / math.pi) ** 0.5
L2M2 = 0.25 * (15.0 / math.pi) ** 0.5
L3M_3 = 0.25 * (17.5 / math.pi) ** 0.5
L3M_2 = 0.5 * (105.0 / math.pi) ** 0.5
L3M_1 = 0.25 * (10.5 / math.pi) ** 0.5
L3M0 = 0.25 * (7.0 / math.pi) ** 0.5
L3M1 = 0.25 * (10.5 / math.pi) ** 0.5
L3M2 = 0.25 * (105.0 / math.pi) ** 0.5
L3M3 = 0.25 * (17.5 / math.pi) ** 0.5


def _sh_kernel(in_ref, out_ref):
    odt = out_ref.dtype
    # Compute in f32 even for bf16 I/O (v5e has no bf16 VPU datapath); cast at store.
    v = in_ref[...].astype(jnp.float32)      # (3, TN) lane-dense
    x = v[0:1, :]                            # (1, TN)
    y = v[1:2, :]
    z = v[2:3, :]

    # Hoisted common subexpressions.
    xx = x * x
    yy = y * y
    zz = z * z
    xy = x * y
    xx_m_yy = xx - yy
    t2 = 2.0 * zz - xx - yy
    t4 = 4.0 * zz - xx - yy

    # One full-width sublane row per SH basis (no lane-axis concatenate).
    out_ref[0:1, :] = jnp.full(x.shape, L0, dtype=odt)
    out_ref[1:2, :] = (-L1 * y).astype(odt)
    out_ref[2:3, :] = (L1 * z).astype(odt)
    out_ref[3:4, :] = (-L1 * x).astype(odt)
    out_ref[4:5, :] = (L2M_2 * xy).astype(odt)
    out_ref[5:6, :] = (-L2M_1 * y * z).astype(odt)
    out_ref[6:7, :] = (L2M0 * t2).astype(odt)
    out_ref[7:8, :] = (-L2M1 * x * z).astype(odt)
    out_ref[8:9, :] = (L2M2 * xx_m_yy).astype(odt)
    out_ref[9:10, :] = (-L3M_3 * y * (3.0 * xx - yy)).astype(odt)
    out_ref[10:11, :] = (L3M_2 * xy * z).astype(odt)
    out_ref[11:12, :] = (-L3M_1 * y * t4).astype(odt)
    out_ref[12:13, :] = (L3M0 * z * (2.0 * zz - 3.0 * xx - 3.0 * yy)).astype(odt)
    out_ref[13:14, :] = (-L3M1 * x * t4).astype(odt)
    out_ref[14:15, :] = (L3M2 * z * xx_m_yy).astype(odt)
    out_ref[15:16, :] = (-L3M3 * x * (xx - 3.0 * yy)).astype(odt)


def sh_encode(inp, tile_n=8192):
    """inp: (..., 3) float array -> (..., 16) SH encoding."""
    assert inp.shape[-1] == 3, "last dim must be 3 (x, y, z)"
    batch_shape = inp.shape[:-1]
    n = math.prod(batch_shape) if batch_shape else 1

    # Feature-major (3, N): layout plumbing so the kernel is lane-dense.
    flat = inp.reshape(n, 3).T                               # (3, N)

    # Tile over N only; keep tn a multiple of 128 and no larger than needed.
    tile_n = max(128, (tile_n // 128) * 128)
    tn = min(tile_n, pl.cdiv(n, 128) * 128)
    grid = max(1, pl.cdiv(n, tn))

    out_t = pl.pallas_call(
        _sh_kernel,
        out_shape=jax.ShapeDtypeStruct((16, n), inp.dtype),
        grid_spec=pltpu.PrefetchScalarGridSpec(
            num_scalar_prefetch=0,
            grid=(grid,),
            in_specs=[pl.BlockSpec((3, tn), lambda i: (0, i))],
            out_specs=pl.BlockSpec((16, tn), lambda i: (0, i)),
        ),
        compiler_params=pltpu.CompilerParams(
            dimension_semantics=("parallel",)),
    )(flat)

    return out_t.T.reshape(*batch_shape, 16)


def _sh_reference(inp):
    """Plain-JAX reference mirroring the PyTorch forward, for validation."""
    x, y, z = inp[..., 0], inp[..., 1], inp[..., 2]
    xx, yy, zz = x * x, y * y, z * z
    cols = [
        jnp.full_like(x, L0),
        -L1 * y, L1 * z, -L1 * x,
        L2M_2 * x * y, -L2M_1 * y * z,
        L2M0 * (2.0 * zz - xx - yy), -L2M1 * x * z, L2M2 * (xx - yy),
        -L3M_3 * y * (3.0 * xx - yy), L3M_2 * x * y * z,
        -L3M_1 * y * (4.0 * zz - xx - yy),
        L3M0 * z * (2.0 * zz - 3.0 * xx - 3.0 * yy),
        -L3M1 * x * (4.0 * zz - xx - yy),
        L3M2 * z * (xx - yy), -L3M3 * x * (xx - 3.0 * yy),
    ]
    return jnp.stack(cols, axis=-1)


if __name__ == "__main__":
    key = jax.random.PRNGKey(0)
    # Small example: batch of 2, 8x8 "rays", each with a 3-D direction.
    x = jax.random.normal(key, (2, 8, 8, 3), dtype=jnp.float32)
    # Normalize directions (typical SH usage; encoding works on any input).
    x = x / jnp.linalg.norm(x, axis=-1, keepdims=True)

    out = sh_encode(x)
    out = jax.block_until_ready(out)

    ref = _sh_reference(x)
    assert out.shape == (2, 8, 8, 16), out.shape
    assert jnp.allclose(out, ref, atol=1e-5, rtol=1e-5), "mismatch vs reference"

    print("KERNEL_OK")
</pallas_src>

<mosaic_0001>
module attributes {stable_mosaic.version = 11 : i64} {
  func.func @_sh_kernel(%arg0: i32, %arg1: memref<3x128xf32, #tpu.memory_space<vmem>>, %arg2: memref<16x128xf32, #tpu.memory_space<vmem>>) attributes {dimension_semantics = [#tpu.dimension_semantics<parallel>], iteration_bounds = array<i64: 1>, scalar_prefetch = 0 : i64, scratch_operands = 0 : i64, tpu.core_type = #tpu.core_type<tc>, window_params = [{transform_indices = @transform_0, window_bounds = array<i64: 3, 128>}, {transform_indices = @transform_1, window_bounds = array<i64: 16, 128>}]} {
    %c0 = arith.constant 0 : index
    %c0_0 = arith.constant 0 : index
    %0 = vector.load %arg1[%c0, %c0_0] : memref<3x128xf32, #tpu.memory_space<vmem>>, vector<3x128xf32>
    %1 = vector.extract_strided_slice %0 {offsets = [0, 0], sizes = [1, 128], strides = [1, 1]} : vector<3x128xf32> to vector<1x128xf32>
    %2 = vector.extract_strided_slice %0 {offsets = [1, 0], sizes = [1, 128], strides = [1, 1]} : vector<3x128xf32> to vector<1x128xf32>
    %3 = vector.extract_strided_slice %0 {offsets = [2, 0], sizes = [1, 128], strides = [1, 1]} : vector<3x128xf32> to vector<1x128xf32>
    %4 = arith.mulf %1, %1 : vector<1x128xf32>
    %5 = arith.mulf %2, %2 : vector<1x128xf32>
    %6 = arith.mulf %3, %3 : vector<1x128xf32>
    %7 = arith.mulf %1, %2 : vector<1x128xf32>
    %8 = arith.subf %4, %5 : vector<1x128xf32>
    %cst = arith.constant 2.000000e+00 : f32
    %9 = vector.broadcast %cst : f32 to vector<1x128xf32>
    %10 = arith.mulf %9, %6 : vector<1x128xf32>
    %11 = arith.subf %10, %4 : vector<1x128xf32>
    %12 = arith.subf %11, %5 : vector<1x128xf32>
    %cst_1 = arith.constant 4.000000e+00 : f32
    %13 = vector.broadcast %cst_1 : f32 to vector<1x128xf32>
    %14 = arith.mulf %13, %6 : vector<1x128xf32>
    %15 = arith.subf %14, %4 : vector<1x128xf32>
    %16 = arith.subf %15, %5 : vector<1x128xf32>
    %cst_2 = arith.constant 0.282094806 : f32
    %17 = vector.broadcast %cst_2 : f32 to vector<1x128xf32>
    %c0_3 = arith.constant 0 : index
    %c0_4 = arith.constant 0 : index
    %18 = vector.load %arg2[%c0_3, %c0_4] : memref<16x128xf32, #tpu.memory_space<vmem>>, vector<1x128xf32>
    tpu.vector_store %arg2[%c0_3, %c0_4], %17 {strides = array<i32>} : memref<16x128xf32, #tpu.memory_space<vmem>>, vector<1x128xf32>,
    %cst_5 = arith.constant -0.488602519 : f32
    %19 = vector.broadcast %cst_5 : f32 to vector<1x128xf32>
    %20 = arith.mulf %19, %2 : vector<1x128xf32>
    %c1 = arith.constant 1 : index
    %c0_6 = arith.constant 0 : index
    %21 = vector.load %arg2[%c1, %c0_6] : memref<16x128xf32, #tpu.memory_space<vmem>>, vector<1x128xf32>
    tpu.vector_store %arg2[%c1, %c0_6], %20 {strides = array<i32>} : memref<16x128xf32, #tpu.memory_space<vmem>>, vector<1x128xf32>,
    %cst_7 = arith.constant 0.488602519 : f32
    %22 = vector.broadcast %cst_7 : f32 to vector<1x128xf32>
    %23 = arith.mulf %22, %3 : vector<1x128xf32>
    %c2 = arith.constant 2 : index
    %c0_8 = arith.constant 0 : index
    %24 = vector.load %arg2[%c2, %c0_8] : memref<16x128xf32, #tpu.memory_space<vmem>>, vector<1x128xf32>
    tpu.vector_store %arg2[%c2, %c0_8], %23 {strides = array<i32>} : memref<16x128xf32, #tpu.memory_space<vmem>>, vector<1x128xf32>,
    %cst_9 = arith.constant -0.488602519 : f32
    %25 = vector.broadcast %cst_9 : f32 to vector<1x128xf32>
    %26 = arith.mulf %25, %1 : vector<1x128xf32>
    %c3 = arith.constant 3 : index
    %c0_10 = arith.constant 0 : index
    %27 = vector.load %arg2[%c3, %c0_10] : memref<16x128xf32, #tpu.memory_space<vmem>>, vector<1x128xf32>
    tpu.vector_store %arg2[%c3, %c0_10], %26 {strides = array<i32>} : memref<16x128xf32, #tpu.memory_space<vmem>>, vector<1x128xf32>,
    %cst_11 = arith.constant 1.09254849 : f32
    %28 = vector.broadcast %cst_11 : f32 to vector<1x128xf32>
    %29 = arith.mulf %28, %7 : vector<1x128xf32>
    %c4 = arith.constant 4 : index
    %c0_12 = arith.constant 0 : index
    %30 = vector.load %arg2[%c4, %c0_12] : memref<16x128xf32, #tpu.memory_space<vmem>>, vector<1x128xf32>
    tpu.vector_store %arg2[%c4, %c0_12], %29 {strides = array<i32>} : memref<16x128xf32, #tpu.memory_space<vmem>>, vector<1x128xf32>,
    %cst_13 = arith.constant -1.09254849 : f32
    %31 = vector.broadcast %cst_13 : f32 to vector<1x128xf32>
    %32 = arith.mulf %31, %2 : vector<1x128xf32>
    %33 = arith.mulf %32, %3 : vector<1x128xf32>
    %c5 = arith.constant 5 : index
    %c0_14 = arith.constant 0 : index
    %34 = vector.load %arg2[%c5, %c0_14] : memref<16x128xf32, #tpu.memory_space<vmem>>, vector<1x128xf32>
    tpu.vector_store %arg2[%c5, %c0_14], %33 {strides = array<i32>} : memref<16x128xf32, #tpu.memory_space<vmem>>, vector<1x128xf32>,
    %cst_15 = arith.constant 0.31539157 : f32
    %35 = vector.broadcast %cst_15 : f32 to vector<1x128xf32>
    %36 = arith.mulf %35, %12 : vector<1x128xf32>
    %c6 = arith.constant 6 : index
    %c0_16 = arith.constant 0 : index
    %37 = vector.load %arg2[%c6, %c0_16] : memref<16x128xf32, #tpu.memory_space<vmem>>, vector<1x128xf32>
    tpu.vector_store %arg2[%c6, %c0_16], %36 {strides = array<i32>} : memref<16x128xf32, #tpu.memory_space<vmem>>, vector<1x128xf32>,
    %cst_17 = arith.constant -1.09254849 : f32
    %38 = vector.broadcast %cst_17 : f32 to vector<1x128xf32>
    %39 = arith.mulf %38, %1 : vector<1x128xf32>
    %40 = arith.mulf %39, %3 : vector<1x128xf32>
    %c7 = arith.constant 7 : index
    %c0_18 = arith.constant 0 : index
    %41 = vector.load %arg2[%c7, %c0_18] : memref<16x128xf32, #tpu.memory_space<vmem>>, vector<1x128xf32>
    tpu.vector_store %arg2[%c7, %c0_18], %40 {strides = array<i32>} : memref<16x128xf32, #tpu.memory_space<vmem>>, vector<1x128xf32>,
    %cst_19 = arith.constant 0.546274245 : f32
    %42 = vector.broadcast %cst_19 : f32 to vector<1x128xf32>
    %43 = arith.mulf %42, %8 : vector<1x128xf32>
    %c8 = arith.constant 8 : index
    %c0_20 = arith.constant 0 : index
    %44 = vector.load %arg2[%c8, %c0_20] : memref<16x128xf32, #tpu.memory_space<vmem>>, vector<1x128xf32>
    tpu.vector_store %arg2[%c8, %c0_20], %43 {strides = array<i32>} : memref<16x128xf32, #tpu.memory_space<vmem>>, vector<1x128xf32>,
    %cst_21 = arith.constant -0.590043604 : f32
    %45 = vector.broadcast %cst_21 : f32 to vector<1x128xf32>
    %46 = arith.mulf %45, %2 : vector<1x128xf32>
    %cst_22 = arith.constant 3.000000e+00 : f32
    %47 = vector.broadcast %cst_22 : f32 to vector<1x128xf32>
    %48 = arith.mulf %47, %4 : vector<1x128xf32>
    %49 = arith.subf %48, %5 : vector<1x128xf32>
    %50 = arith.mulf %46, %49 : vector<1x128xf32>
    %c9 = arith.constant 9 : index
    %c0_23 = arith.constant 0 : index
    %51 = vector.load %arg2[%c9, %c0_23] : memref<16x128xf32, #tpu.memory_space<vmem>>, vector<1x128xf32>
    tpu.vector_store %arg2[%c9, %c0_23], %50 {strides = array<i32>} : memref<16x128xf32, #tpu.memory_space<vmem>>, vector<1x128xf32>,
    %cst_24 = arith.constant 2.89061141 : f32
    %52 = vector.broadcast %cst_24 : f32 to vector<1x128xf32>
    %53 = arith.mulf %52, %7 : vector<1x128xf32>
    %54 = arith.mulf %53, %3 : vector<1x128xf32>
    %c10 = arith.constant 10 : index
    %c0_25 = arith.constant 0 : index
    %55 = vector.load %arg2[%c10, %c0_25] : memref<16x128xf32, #tpu.memory_space<vmem>>, vector<1x128xf32>
    tpu.vector_store %arg2[%c10, %c0_25], %54 {strides = array<i32>} : memref<16x128xf32, #tpu.memory_space<vmem>>, vector<1x128xf32>,
    %cst_26 = arith.constant -0.457045794 : f32
    %56 = vector.broadcast %cst_26 : f32 to vector<1x128xf32>
    %57 = arith.mulf %56, %2 : vector<1x128xf32>
    %58 = arith.mulf %57, %16 : vector<1x128xf32>
    %c11 = arith.constant 11 : index
    %c0_27 = arith.constant 0 : index
    %59 = vector.load %arg2[%c11, %c0_27] : memref<16x128xf32, #tpu.memory_space<vmem>>, vector<1x128xf32>
    tpu.vector_store %arg2[%c11, %c0_27], %58 {strides = array<i32>} : memref<16x128xf32, #tpu.memory_space<vmem>>, vector<1x128xf32>,
    %cst_28 = arith.constant 0.373176336 : f32
    %60 = vector.broadcast %cst_28 : f32 to vector<1x128xf32>
    %61 = arith.mulf %60, %3 : vector<1x128xf32>
    %cst_29 = arith.constant 2.000000e+00 : f32
    %62 = vector.broadcast %cst_29 : f32 to vector<1x128xf32>
    %63 = arith.mulf %62, %6 : vector<1x128xf32>
    %cst_30 = arith.constant 3.000000e+00 : f32
    %64 = vector.broadcast %cst_30 : f32 to vector<1x128xf32>
    %65 = arith.mulf %64, %4 : vector<1x128xf32>
    %66 = arith.subf %63, %65 : vector<1x128xf32>
    %cst_31 = arith.constant 3.000000e+00 : f32
    %67 = vector.broadcast %cst_31 : f32 to vector<1x128xf32>
    %68 = arith.mulf %67, %5 : vector<1x128xf32>
    %69 = arith.subf %66, %68 : vector<1x128xf32>
    %70 = arith.mulf %61, %69 : vector<1x128xf32>
    %c12 = arith.constant 12 : index
    %c0_32 = arith.constant 0 : index
    %71 = vector.load %arg2[%c12, %c0_32] : memref<16x128xf32, #tpu.memory_space<vmem>>, vector<1x128xf32>
    tpu.vector_store %arg2[%c12, %c0_32], %70 {strides = array<i32>} : memref<16x128xf32, #tpu.memory_space<vmem>>, vector<1x128xf32>,
    %cst_33 = arith.constant -0.457045794 : f32
    %72 = vector.broadcast %cst_33 : f32 to vector<1x128xf32>
    %73 = arith.mulf %72, %1 : vector<1x128xf32>
    %74 = arith.mulf %73, %16 : vector<1x128xf32>
    %c13 = arith.constant 13 : index
    %c0_34 = arith.constant 0 : index
    %75 = vector.load %arg2[%c13, %c0_34] : memref<16x128xf32, #tpu.memory_space<vmem>>, vector<1x128xf32>
    tpu.vector_store %arg2[%c13, %c0_34], %74 {strides = array<i32>} : memref<16x128xf32, #tpu.memory_space<vmem>>, vector<1x128xf32>,
    %cst_35 = arith.constant 1.44530571 : f32
    %76 = vector.broadcast %cst_35 : f32 to vector<1x128xf32>
    %77 = arith.mulf %76, %3 : vector<1x128xf32>
    %78 = arith.mulf %77, %8 : vector<1x128xf32>
    %c14 = arith.constant 14 : index
    %c0_36 = arith.constant 0 : index
    %79 = vector.load %arg2[%c14, %c0_36] : memref<16x128xf32, #tpu.memory_space<vmem>>, vector<1x128xf32>
    tpu.vector_store %arg2[%c14, %c0_36], %78 {strides = array<i32>} : memref<16x128xf32, #tpu.memory_space<vmem>>, vector<1x128xf32>,
    %cst_37 = arith.constant -0.590043604 : f32
    %80 = vector.broadcast %cst_37 : f32 to vector<1x128xf32>
    %81 = arith.mulf %80, %1 : vector<1x128xf32>
    %cst_38 = arith.constant 3.000000e+00 : f32
    %82 = vector.broadcast %cst_38 : f32 to vector<1x128xf32>
    %83 = arith.mulf %82, %5 : vector<1x128xf32>
    %84 = arith.subf %4, %83 : vector<1x128xf32>
    %85 = arith.mulf %81, %84 : vector<1x128xf32>
    %c15 = arith.constant 15 : index
    %c0_39 = arith.constant 0 : index
    %86 = vector.load %arg2[%c15, %c0_39] : memref<16x128xf32, #tpu.memory_space<vmem>>, vector<1x128xf32>
    tpu.vector_store %arg2[%c15, %c0_39], %85 {strides = array<i32>} : memref<16x128xf32, #tpu.memory_space<vmem>>, vector<1x128xf32>,
    return
  }
  func.func @transform_0(%arg0: i32) -> (i32, i32) {
    %c0_i32 = arith.constant 0 : i32
    %c0_i32_0 = arith.constant 0 : i32
    return %c0_i32, %arg0 : i32, i32
  }
  func.func @transform_1(%arg0: i32) -> (i32, i32) {
    %c0_i32 = arith.constant 0 : i32
    %c0_i32_0 = arith.constant 0 : i32
    return %c0_i32, %arg0 : i32, i32
  }
}

</mosaic_0001>

<bundles_post_ra>
// kernel: tpu_custom_call.1
= control target key start
LH: loop header
LB: loop body
LE: loop exit
PB: predicated region body
PF: predicated region fallthrough
CT: control target
= control target key end

     0   :  { %6 = vsyncpa [#allocation3], 0  ;;  %s201_s0 = inlined_call_operand.hbm [shape: f32[3,128], index: 0, kind: input, shape index: {}]   ;;  %s202_s1 = inlined_call_operand.hbm [shape: f32[16,128], index: 1, kind: output, shape index: {}]  }
   0x1   :  { %7 = vsyncpa [#allocation4], 0  ;;  %s13_s8 = sshll.u32 %s201_s0, 4  ;;  %s180_s9 = smov [#allocation2]   ;;  %s14_s8 = int_to_ptr.hbm [resolvable:$true] %s13_s8 }
   0x2   :  { %s15_s10 = sshll.u32 %s180_s9, 4  ;;  %s16_s10 = int_to_ptr.vmem [resolvable:$true] %s15_s10 }
   0x3   :  { %18 = dma.hbm_to_vmem [thread:$0]  %s14_s8, 64, %s16_s10, [#allocation3]  }
   0x4   :  { %176 = dma.done.wait [#allocation3], 64  }
   0x5   :  { %177 = vsyncadd [#allocation3], 4294967232  ;;  %v181_v0 = vmov 0.2820948   ;;  %v23_v1 = vld [vmem:[#allocation2] sm:$0x7] }
   0x6   :  { %43 = vst [vmem:[#allocation5] sm:$0x1] %v181_v0  ;;  %v44_v2 = vmul.f32 -0.48860252, %v23_v1  ;;  %v46_v3 = vmul.f32 0.48860252, %v23_v1  ;;  %v24_v5 = vmul.f32 %v23_v1, %v23_v1 }
   0x7   :  { %v26_v4 = vrot.slane %v23_v1, 1  ;;  %v51_v6 = vmul.f32 -1.0925485, %v23_v1  ;;  %v56_v7 = vrot.slane %v23_v1, 2  ;;  %v62_v8 = vmul.f32 -0.5900436, %v23_v1 }
   0x8   :  { %45 = vst [vmem:[#allocation5] sm:$0x2] %v44_v2  ;;  %v33_v10 = vmul.f32 2.0, %v24_v5  ;;  %v34_v11 = vrot.slane %v24_v5, 6  ;;  %v37_v12 = vrot.slane %v24_v5, 7  ;;  %v30_v15 = vrot.slane %v24_v5, 1 }
   0x9   :  { %v28_v9 = vmul.f32 %v26_v4, %v23_v1  ;;  %48 = vst [vmem:[#allocation5 + $0x3] sm:$0x1] %v44_v2  ;;  %v52_v13 = vmul.f32 %v51_v6, %v26_v4  ;;  %v58_v14 = vmul.f32 %v56_v7, %v51_v6  ;;  %v63_v16 = vmul.f32 3.0, %v24_v5  ;;  %s182_s0 = smov [#allocation5]   ;;  %s110_s14 = sshll.u32 %s202_s1, 4  ;;  %s111_s14 = int_to_ptr.hbm [resolvable:$true] %s110_s14 }
   0xa   :  { %47 = vst [vmem:[#allocation5] sm:$0x4] %v46_v3  ;;  %v36_v18 = vsub.f32 %v33_v10, %v34_v11  ;;  %v32_v20 = vsub.f32 %v24_v5, %v30_v15  ;;  %v40_v22 = vmul.f32 4.0, %v24_v5  ;;  %v73_v23 = vmul.f32 -0.4570458, %v23_v1  ;;  %s108_s11 = sshll.u32 %s182_s0, 4  ;;  %s109_s11 = int_to_ptr.vmem [resolvable:$true] %s108_s11 }
   0xb   :  { %v49_v17 = vmul.f32 1.0925485, %v28_v9  ;;  %v70_v19 = vmul.f32 2.8906114, %v28_v9  ;;  %53 = vst [vmem:[#allocation5 + $0x4] sm:$0x2] %v52_v13  ;;  %v64_v21 = vsub.f32 %v63_v16, %v30_v15 }
   0xc   :  { %v39_v24 = vsub.f32 %v36_v18, %v37_v12  ;;  %v79_v26 = vmul.f32 0.37317634, %v23_v1  ;;  %v81_v27 = vrot.slane %v63_v16, 6  ;;  %59 = vst [vmem:[#allocation5 + $0x7] sm:$0x1] %v58_v14  ;;  %v41_v30 = vsub.f32 %v40_v22, %v34_v11  ;;  %s183_s15 = smov 128  }
   0xd   :  { %50 = vst [vmem:[#allocation5 + $0x4] sm:$0x1] %v49_v17  ;;  %v71_v25 = vmul.f32 %v70_v19, %v56_v7  ;;  %v60_v28 = vmul.f32 0.54627424, %v32_v20  ;;  %v66_v29 = vrot.slane %v64_v21, 7  ;;  %v84_v31 = vrot.slane %v63_v16, 7 }
   0xe   :  { %v54_v32 = vmul.f32 0.31539157, %v39_v24  ;;  %v83_v33 = vsub.f32 %v33_v10, %v81_v27  ;;  %v93_v34 = vmul.f32 1.4453057, %v23_v1  ;;  %v42_v36 = vsub.f32 %v41_v30, %v37_v12  ;;  %s184_s16 = smov 8  }
   0xf   :  { %72 = vst [vmem:[#allocation5 + $0xa] sm:$0x1] %v71_v25  ;;  %v68_v35 = vmul.f32 %v66_v29, %v62_v8  ;;  %v95_v37 = vrot.slane %v32_v20, 6  ;;  %v99_v38 = vrot.slane %v63_v16, 1 }
  0x10   :  { %61 = vst [vmem:[#allocation5 + $0x8] sm:$0x1] %v60_v28  ;;  %v86_v39 = vsub.f32 %v83_v33, %v84_v31  ;;  %v75_v40 = vrot.slane %v42_v36, 1  ;;  %v89_v41 = vrot.slane %v42_v36, 2 }
  0x11   :  { %55 = vst [vmem:[#allocation5 + $0x4] sm:$0x4] %v54_v32  ;;  %v97_v42 = vmul.f32 %v95_v37, %v93_v34  ;;  %v101_v43 = vsub.f32 %v24_v5, %v99_v38 }
  0x12   :  { %69 = vst [vmem:[#allocation5 + $0x8] sm:$0x2] %v68_v35  ;;  %v87_v44 = vmul.f32 %v86_v39, %v79_v26  ;;  %v77_v45 = vmul.f32 %v75_v40, %v73_v23  ;;  %v91_v46 = vmul.f32 %v89_v41, %v73_v23 }
  0x13   :  { %98 = vst [vmem:[#allocation5 + $0xc] sm:$0x4] %v97_v42  ;;  %v102_v47 = vmul.f32 %v101_v43, %v62_v8 }
  0x14   :  { %88 = vst [vmem:[#allocation5 + $0xa] sm:$0x4] %v87_v44 }
  0x15   :  { %78 = vst [vmem:[#allocation5 + $0xa] sm:$0x2] %v77_v45 }
  0x16   :  { %92 = vst [vmem:[#allocation5 + $0xd] sm:$0x1] %v91_v46 }
  0x17   :  { %103 = vst [vmem:[#allocation5 + $0xf] sm:$0x1] %v102_v47 }
  0x18   :  { %116 = dma.vmem_to_hbm [thread:$0]  %s109_s11, 256, %s111_s14, [#allocation4], %s183_s15, %s183_s15, %s184_s16  }
  0x19   :  { %178 = dma.done.wait [#allocation4], 256  }
  0x1a   :  { %179 = vsyncadd [#allocation4], 4294967040 }
  0x1b   :  { %121 = vsyncpa [#allocation3], 1 }
  0x1c   :  { %122 = vsyncpa [#allocation4], 1 }

</bundles_post_ra>
